<compile_context>
chip_gen: v6e
topology: v6e:2x2x1
jax: 0.10.0
libtpu: 0.0.40
codegen_flags: <defaults>
</compile_context>

<pallas_src>
import math
import functools

import jax
import jax.numpy as jnp
from jax.experimental import pallas as pl
from jax.experimental.pallas import tpu as pltpu


# Finite "-inf": exact for valid rows (exp underflows to 0) and NaN-free. The causal
# diagonal is always unmasked, so no row is ever fully masked; if this kernel is ever
# reused with padding masks, fully-masked rows would produce a uniform distribution.
_MASK_VALUE = -1e30


def multi_atten_kernel(x_ref, w_attn_ref, b_attn_ref, w_proj_ref, b_proj_ref,
                       o_ref, *, n_head):
    bb, T, C = x_ref.shape
    D = C // n_head
    Cp = o_ref.shape[-1]                      # lane-padded output width (multiple of 128)

    # ---- QKV projection: one tall MXU matmul over all bb*T rows (bf16 in, f32 acc).
    # x arrives f32 (half the HBM traffic of a wrapper-side bf16 pre-cast); cast here.
    x2 = x_ref[...].reshape(bb * T, C).astype(jnp.bfloat16)
    qkv = jnp.dot(x2, w_attn_ref[...], preferred_element_type=jnp.float32)
    qkv = qkv + b_attn_ref[...]                                          # (bb*T, 3C) f32
    # Single bf16 cast of qkv; all per-head slices below reuse it (no per-head casts).
    # 1/sqrt(D) is already folded into the Q columns of W_attn/b_attn by the wrapper.
    qkv = qkv.astype(jnp.bfloat16).reshape(bb, T, 3 * C)

    # Causal mask as a (T,T) additive f32 bias, computed once, broadcast over batch.
    row = jax.lax.broadcasted_iota(jnp.int32, (T, T), 0)
    col = jax.lax.broadcasted_iota(jnp.int32, (T, T), 1)
    mask_bias = jnp.where(col <= row, jnp.float32(0.0), jnp.float32(_MASK_VALUE))

    w_proj = w_proj_ref[...]                                             # (C, Cp) bf16
    acc = jnp.zeros((bb * T, Cp), jnp.float32)

    # Heads statically unrolled; contractions are batched over the batch dim with the
    # K-transpose folded into the contraction dims (no explicit .T, no concatenate).
    for h in range(n_head):
        q_h = qkv[:, :, h * D:(h + 1) * D]                               # (bb, T, D) bf16
        k_h = qkv[:, :, C + h * D:C + (h + 1) * D]
        v_h = qkv[:, :, 2 * C + h * D:2 * C + (h + 1) * D]

        s = jnp.einsum('bqd,bkd->bqk', q_h, k_h,
                       preferred_element_type=jnp.float32)               # (bb, T, T) f32
        s = s + mask_bias[None, :, :]

        # Softmax in f32 on the VPU; normalization is deferred past the PV matmul so
        # the reciprocal multiply touches (bb,T,D) instead of (bb,T,T).
        m = jnp.max(s, axis=-1, keepdims=True)
        p = jnp.exp(s - m)
        denom = jnp.sum(p, axis=-1, keepdims=True)                       # (bb, T, 1)

        o_h = jnp.einsum('bqk,bkd->bqd', p.astype(jnp.bfloat16), v_h,
                         preferred_element_type=jnp.float32)             # (bb, T, D) f32
        o_h = o_h * pl.reciprocal(denom, approx=True)                    # EUP, broadcast D

        # logits += o_h @ W_proj[h*D:(h+1)*D, :]   (replaces the concatenate)
        acc = acc + jnp.dot(o_h.reshape(bb * T, D).astype(jnp.bfloat16),
                            w_proj[h * D:(h + 1) * D, :],
                            preferred_element_type=jnp.float32)

    acc = acc + b_proj_ref[...]                                          # (1, Cp) f32
    o_ref[...] = acc.reshape(bb, T, Cp).astype(o_ref.dtype)


def _num_tensorcores_per_chip():
    """2 on v7x (megacore pair), 1 on v5e/v6e. Conservative fallback: 1."""
    try:
        kind = jax.devices()[0].device_kind.lower()
        if "v7" in kind:
            return 2
    except Exception:
        pass
    return 1


def _vmem_budget_bytes(bb, T, C, Cp, out_itemsize):
    """Explicit scoped-VMEM budget: 2x-buffered blocks + weights + in-kernel temps."""
    x_blk = bb * T * C * 4
    out_blk = bb * T * Cp * out_itemsize
    weights = C * 3 * C * 2 + 3 * C * 4 + C * Cp * 2 + Cp * 4
    qkv = bb * T * 3 * C * (4 + 2)            # f32 matmul result + bf16 copy
    scores = bb * T * T * 4 * 2               # one head's s and p in f32
    acc = bb * T * Cp * 4
    est = 2 * (x_blk + out_blk) + 2 * weights + qkv + scores + acc
    # 2x headroom, clamped to stay inside v7x's 64 MiB physical VMEM per TensorCore.
    return int(min(max(2 * est, 8 << 20), 48 << 20))


def multi_atten(x, w_attn, b_attn, w_proj, b_proj, *, n_head, batch_block=None):
    B, T, C = x.shape
    D = C // n_head

    # v7x: split the batch across both TensorCores via the "parallel" grid axis.
    if batch_block is None:
        n_tc = _num_tensorcores_per_chip()
        bb = B // n_tc if (n_tc > 1 and B % n_tc == 0) else B
    else:
        bb = batch_block
    assert B % bb == 0
    grid_len = B // bb

    # Fold 1/sqrt(D) into the Q columns of the QKV projection (zero in-kernel work).
    inv_sqrt_d = jnp.float32(1.0 / math.sqrt(D))
    w_attn = w_attn.astype(jnp.float32).at[:, :C].multiply(inv_sqrt_d)
    b_attn = b_attn.astype(jnp.float32).at[:, :C].multiply(inv_sqrt_d)

    # Lane-dense output: pad the projection's output dim up to a multiple of 128 lanes
    # (zero columns); slice back to C afterwards only if padding was actually added.
    Cp = ((C + 127) // 128) * 128
    pad = Cp - C
    w_proj_p = jnp.pad(w_proj, ((0, 0), (0, pad))) if pad else w_proj
    b_proj_p = jnp.pad(b_proj, ((0, 0), (0, pad))) if pad else b_proj

    # Weights are reused -> pre-cast to bf16 once. x stays f32 (cast happens in-kernel).
    w_attn_bf = w_attn.astype(jnp.bfloat16)
    w_proj_bf = w_proj_p.astype(jnp.bfloat16)
    b_proj_f32 = b_proj_p.astype(jnp.float32)

    # Constant-index weight/bias blocks: single-buffer them when the grid is > 1 so
    # the pipeline does not keep a pointless second copy of the weights in VMEM.
    wkw = {"pipeline_mode": pl.Buffered(1)} if grid_len > 1 else {}

    out_dtype = x.dtype
    kernel = functools.partial(multi_atten_kernel, n_head=n_head)
    out = pl.pallas_call(
        kernel,
        out_shape=jax.ShapeDtypeStruct((B, T, Cp), out_dtype),
        grid_spec=pltpu.PrefetchScalarGridSpec(
            num_scalar_prefetch=0,
            grid=(grid_len,),
            in_specs=[
                pl.BlockSpec((bb, T, C), lambda i: (i, 0, 0)),
                pl.BlockSpec((C, 3 * C), lambda i: (0, 0), **wkw),
                pl.BlockSpec((1, 3 * C), lambda i: (0, 0), **wkw),
                pl.BlockSpec((C, Cp), lambda i: (0, 0), **wkw),
                pl.BlockSpec((1, Cp), lambda i: (0, 0), **wkw),
            ],
            out_specs=pl.BlockSpec((bb, T, Cp), lambda i: (i, 0, 0)),
        ),
        compiler_params=pltpu.CompilerParams(
            dimension_semantics=("parallel",),
            vmem_limit_bytes=_vmem_budget_bytes(bb, T, C, Cp,
                                                jnp.dtype(out_dtype).itemsize)),
    )(x, w_attn_bf, b_attn, w_proj_bf, b_proj_f32)

    return out if pad == 0 else out[..., :C]


def multi_atten_ref(x, w_attn, b_attn, w_proj, b_proj, *, n_head):
    """Pure-JAX f32 reference mirroring the PyTorch forward."""
    B, T, C = x.shape
    D = C // n_head
    qkv = x @ w_attn + b_attn[0]
    q, k, v = jnp.split(qkv, 3, axis=2)
    q = q.reshape(B, T, n_head, D).transpose(0, 2, 1, 3)
    k = k.reshape(B, T, n_head, D).transpose(0, 2, 1, 3)
    v = v.reshape(B, T, n_head, D).transpose(0, 2, 1, 3)
    s = jnp.einsum("bhqd,bhkd->bhqk", q, k) / math.sqrt(D)
    mask = jnp.tril(jnp.ones((T, T), dtype=bool))
    s = jnp.where(mask[None, None], s, -jnp.inf)
    p = jax.nn.softmax(s, axis=-1)
    o = jnp.einsum("bhqk,bhkd->bhqd", p, v)
    o = o.transpose(0, 2, 1, 3).reshape(B, T, C)
    return o @ w_proj + b_proj[0]


if __name__ == "__main__":
    # config: n_embd=32, n_head=4, block_size=8  ->  B=2, T=8
    B, T, C, H = 2, 8, 32, 4

    key = jax.random.PRNGKey(0)
    k_x, k_wa, k_ba, k_wp, k_bp = jax.random.split(key, 5)

    x = jax.random.normal(k_x, (B, T, C), dtype=jnp.float32)
    # torch Linear stores [out, in]; weights here are kept pre-transposed as [in, out].
    w_attn = jax.random.normal(k_wa, (C, 3 * C), dtype=jnp.float32) * 0.02
    b_attn = jax.random.normal(k_ba, (1, 3 * C), dtype=jnp.float32) * 0.02
    w_proj = jax.random.normal(k_wp, (C, C), dtype=jnp.float32) * 0.02
    b_proj = jax.random.normal(k_bp, (1, C), dtype=jnp.float32) * 0.02

    out = multi_atten(x, w_attn, b_attn, w_proj, b_proj, n_head=H)
    out = jax.block_until_ready(out)

    ref = multi_atten_ref(x, w_attn, b_attn, w_proj, b_proj, n_head=H)
    assert out.shape == (B, T, C)
    # bf16 MXU operands + approximate (EUP) reciprocal -> bf16-level tolerance vs f32 ref.
    assert jnp.allclose(out, ref, atol=2e-3, rtol=2e-2), "mismatch vs reference"

    print("KERNEL_OK")
</pallas_src>

<mosaic_0001>
module attributes {stable_mosaic.version = 11 : i64} {
  func.func @multi_atten_kernel(%arg0: i32, %arg1: memref<2x8x32xf32, #tpu.memory_space<vmem>>, %arg2: memref<32x96xbf16, #tpu.memory_space<vmem>>, %arg3: memref<1x96xf32, #tpu.memory_space<vmem>>, %arg4: memref<32x128xbf16, #tpu.memory_space<vmem>>, %arg5: memref<1x128xf32, #tpu.memory_space<vmem>>, %arg6: memref<2x8x128xf32, #tpu.memory_space<vmem>>) attributes {dimension_semantics = [#tpu.dimension_semantics<parallel>], iteration_bounds = array<i64: 1>, scalar_prefetch = 0 : i64, scratch_operands = 0 : i64, tpu.core_type = #tpu.core_type<tc>, window_params = [{transform_indices = @transform_0, window_bounds = array<i64: 2, 8, 32>}, {pipeline_mode = #tpu.pipeline_mode<synchronous>, transform_indices = @transform_1, window_bounds = array<i64: 32, 96>}, {pipeline_mode = #tpu.pipeline_mode<synchronous>, transform_indices = @transform_2, window_bounds = array<i64: 1, 96>}, {pipeline_mode = #tpu.pipeline_mode<synchronous>, transform_indices = @transform_3, window_bounds = array<i64: 32, 128>}, {pipeline_mode = #tpu.pipeline_mode<synchronous>, transform_indices = @transform_4, window_bounds = array<i64: 1, 128>}, {transform_indices = @transform_5, window_bounds = array<i64: 2, 8, 128>}]} {
    %c0 = arith.constant 0 : index
    %c0_0 = arith.constant 0 : index
    %c0_1 = arith.constant 0 : index
    %0 = vector.load %arg1[%c0, %c0_0, %c0_1] : memref<2x8x32xf32, #tpu.memory_space<vmem>>, vector<2x8x32xf32>
    %1 = vector.shape_cast %0 : vector<2x8x32xf32> to vector<16x32xf32>
    %2 = arith.truncf %1 : vector<16x32xf32> to vector<16x32xbf16>
    %c0_2 = arith.constant 0 : index
    %c0_3 = arith.constant 0 : index
    %3 = vector.load %arg2[%c0_2, %c0_3] : memref<32x96xbf16, #tpu.memory_space<vmem>>, vector<32x96xbf16>
    %cst = arith.constant dense<0.000000e+00> : vector<16x96xf32>
    %4 = tpu.matmul %2, %3, %cst {dimension_numbers = #tpu.dot_dimension_numbers<[1], [0], [0], [1], [0, 0, 1, 1], [], []>} : vector<16x32xbf16>, vector<32x96xbf16>, vector<16x96xf32> -> vector<16x96xf32>
    %c0_4 = arith.constant 0 : index
    %c0_5 = arith.constant 0 : index
    %5 = vector.load %arg3[%c0_4, %c0_5] : memref<1x96xf32, #tpu.memory_space<vmem>>, vector<1x96xf32>
    %6 = vector.broadcast %5 : vector<1x96xf32> to vector<16x96xf32>
    %7 = arith.addf %4, %6 : vector<16x96xf32>
    %8 = arith.truncf %7 : vector<16x96xf32> to vector<16x96xbf16>
    %9 = vector.shape_cast %8 : vector<16x96xbf16> to vector<2x8x96xbf16>
    %10 = tpu.iota {dimensions = array<i32: 0>} : vector<8x8xi32>
    %11 = tpu.iota {dimensions = array<i32: 1>} : vector<8x8xi32>
    %12 = arith.cmpi sle, %11, %10 : vector<8x8xi32>
    %cst_6 = arith.constant 0.000000e+00 : f32
    %cst_7 = arith.constant -1.000000e+30 : f32
    %13 = vector.broadcast %cst_6 : f32 to vector<8x8xf32>
    %14 = vector.broadcast %cst_7 : f32 to vector<8x8xf32>
    %15 = arith.select %12, %13, %14 : vector<8x8xi1>, vector<8x8xf32>
    %c0_8 = arith.constant 0 : index
    %c0_9 = arith.constant 0 : index
    %16 = vector.load %arg4[%c0_8, %c0_9] : memref<32x128xbf16, #tpu.memory_space<vmem>>, vector<32x128xbf16>
    %cst_10 = arith.constant 0.000000e+00 : f32
    %17 = vector.broadcast %cst_10 : f32 to vector<16x128xf32>
    %18 = vector.extract_strided_slice %9 {offsets = [0, 0, 0], sizes = [2, 8, 8], strides = [1, 1, 1]} : vector<2x8x96xbf16> to vector<2x8x8xbf16>
    %19 = vector.extract_strided_slice %9 {offsets = [0, 0, 32], sizes = [2, 8, 8], strides = [1, 1, 1]} : vector<2x8x96xbf16> to vector<2x8x8xbf16>
    %20 = vector.extract_strided_slice %9 {offsets = [0, 0, 64], sizes = [2, 8, 8], strides = [1, 1, 1]} : vector<2x8x96xbf16> to vector<2x8x8xbf16>
    "tpu.trace_start"() <{level = 10 : i32, message = "bqd,bkd->bqk"}> : () -> ()
    %cst_11 = arith.constant dense<0.000000e+00> : vector<2x8x8xf32>
    %21 = tpu.matmul %18, %19, %cst_11 {dimension_numbers = #tpu.dot_dimension_numbers<[2], [2], [1], [1], [0, 0, 0, 1, 1, 1], [0], [0]>} : vector<2x8x8xbf16>, vector<2x8x8xbf16>, vector<2x8x8xf32> -> vector<2x8x8xf32>
    "tpu.trace_stop"() : () -> ()
    %22 = vector.shape_cast %15 : vector<8x8xf32> to vector<1x8x8xf32>
    %23 = vector.broadcast %22 : vector<1x8x8xf32> to vector<2x8x8xf32>
    %24 = arith.addf %21, %23 : vector<2x8x8xf32>
    %cst_12 = arith.constant dense<0xFF800000> : vector<2x8xf32>
    %25 = vector.multi_reduction <maximumf>, %24, %cst_12 [2] : vector<2x8x8xf32> to vector<2x8xf32>
    %26 = vector.shape_cast %25 : vector<2x8xf32> to vector<2x8x1xf32>
    %27 = vector.broadcast %26 : vector<2x8x1xf32> to vector<2x8x8xf32>
    %28 = arith.subf %24, %27 : vector<2x8x8xf32>
    %29 = math.exp %28 : vector<2x8x8xf32>
    %cst_13 = arith.constant dense<0.000000e+00> : vector<2x8xf32>
    %30 = vector.multi_reduction <add>, %29, %cst_13 [2] : vector<2x8x8xf32> to vector<2x8xf32>
    %31 = vector.shape_cast %30 : vector<2x8xf32> to vector<2x8x1xf32>
    %32 = arith.truncf %29 : vector<2x8x8xf32> to vector<2x8x8xbf16>
    "tpu.trace_start"() <{level = 10 : i32, message = "bqk,bkd->bqd"}> : () -> ()
    %cst_14 = arith.constant dense<0.000000e+00> : vector<2x8x8xf32>
    %33 = tpu.matmul %32, %20, %cst_14 {dimension_numbers = #tpu.dot_dimension_numbers<[2], [1], [1], [2], [0, 0, 0, 1, 1, 2], [0], [0]>} : vector<2x8x8xbf16>, vector<2x8x8xbf16>, vector<2x8x8xf32> -> vector<2x8x8xf32>
    "tpu.trace_stop"() : () -> ()
    %34 = tpu.reciprocal %31 {approx = true} : vector<2x8x1xf32> -> vector<2x8x1xf32>
    %35 = vector.broadcast %34 : vector<2x8x1xf32> to vector<2x8x8xf32>
    %36 = arith.mulf %33, %35 : vector<2x8x8xf32>
    %37 = vector.shape_cast %36 : vector<2x8x8xf32> to vector<16x8xf32>
    %38 = arith.truncf %37 : vector<16x8xf32> to vector<16x8xbf16>
    %39 = vector.extract_strided_slice %16 {offsets = [0, 0], sizes = [8, 128], strides = [1, 1]} : vector<32x128xbf16> to vector<8x128xbf16>
    %cst_15 = arith.constant dense<0.000000e+00> : vector<16x128xf32>
    %40 = tpu.matmul %38, %39, %cst_15 {dimension_numbers = #tpu.dot_dimension_numbers<[1], [0], [0], [1], [0, 0, 1, 1], [], []>} : vector<16x8xbf16>, vector<8x128xbf16>, vector<16x128xf32> -> vector<16x128xf32>
    %41 = arith.addf %17, %40 : vector<16x128xf32>
    %42 = vector.extract_strided_slice %9 {offsets = [0, 0, 8], sizes = [2, 8, 8], strides = [1, 1, 1]} : vector<2x8x96xbf16> to vector<2x8x8xbf16>
    %43 = vector.extract_strided_slice %9 {offsets = [0, 0, 40], sizes = [2, 8, 8], strides = [1, 1, 1]} : vector<2x8x96xbf16> to vector<2x8x8xbf16>
    %44 = vector.extract_strided_slice %9 {offsets = [0, 0, 72], sizes = [2, 8, 8], strides = [1, 1, 1]} : vector<2x8x96xbf16> to vector<2x8x8xbf16>
    "tpu.trace_start"() <{level = 10 : i32, message = "bqd,bkd->bqk"}> : () -> ()
    %cst_16 = arith.constant dense<0.000000e+00> : vector<2x8x8xf32>
    %45 = tpu.matmul %42, %43, %cst_16 {dimension_numbers = #tpu.dot_dimension_numbers<[2], [2], [1], [1], [0, 0, 0, 1, 1, 1], [0], [0]>} : vector<2x8x8xbf16>, vector<2x8x8xbf16>, vector<2x8x8xf32> -> vector<2x8x8xf32>
    "tpu.trace_stop"() : () -> ()
    %46 = vector.shape_cast %15 : vector<8x8xf32> to vector<1x8x8xf32>
    %47 = vector.broadcast %46 : vector<1x8x8xf32> to vector<2x8x8xf32>
    %48 = arith.addf %45, %47 : vector<2x8x8xf32>
    %cst_17 = arith.constant dense<0xFF800000> : vector<2x8xf32>
    %49 = vector.multi_reduction <maximumf>, %48, %cst_17 [2] : vector<2x8x8xf32> to vector<2x8xf32>
    %50 = vector.shape_cast %49 : vector<2x8xf32> to vector<2x8x1xf32>
    %51 = vector.broadcast %50 : vector<2x8x1xf32> to vector<2x8x8xf32>
    %52 = arith.subf %48, %51 : vector<2x8x8xf32>
    %53 = math.exp %52 : vector<2x8x8xf32>
    %cst_18 = arith.constant dense<0.000000e+00> : vector<2x8xf32>
    %54 = vector.multi_reduction <add>, %53, %cst_18 [2] : vector<2x8x8xf32> to vector<2x8xf32>
    %55 = vector.shape_cast %54 : vector<2x8xf32> to vector<2x8x1xf32>
    %56 = arith.truncf %53 : vector<2x8x8xf32> to vector<2x8x8xbf16>
    "tpu.trace_start"() <{level = 10 : i32, message = "bqk,bkd->bqd"}> : () -> ()
    %cst_19 = arith.constant dense<0.000000e+00> : vector<2x8x8xf32>
    %57 = tpu.matmul %56, %44, %cst_19 {dimension_numbers = #tpu.dot_dimension_numbers<[2], [1], [1], [2], [0, 0, 0, 1, 1, 2], [0], [0]>} : vector<2x8x8xbf16>, vector<2x8x8xbf16>, vector<2x8x8xf32> -> vector<2x8x8xf32>
    "tpu.trace_stop"() : () -> ()
    %58 = tpu.reciprocal %55 {approx = true} : vector<2x8x1xf32> -> vector<2x8x1xf32>
    %59 = vector.broadcast %58 : vector<2x8x1xf32> to vector<2x8x8xf32>
    %60 = arith.mulf %57, %59 : vector<2x8x8xf32>
    %61 = vector.shape_cast %60 : vector<2x8x8xf32> to vector<16x8xf32>
    %62 = arith.truncf %61 : vector<16x8xf32> to vector<16x8xbf16>
    %63 = vector.extract_strided_slice %16 {offsets = [8, 0], sizes = [8, 128], strides = [1, 1]} : vector<32x128xbf16> to vector<8x128xbf16>
    %cst_20 = arith.constant dense<0.000000e+00> : vector<16x128xf32>
    %64 = tpu.matmul %62, %63, %cst_20 {dimension_numbers = #tpu.dot_dimension_numbers<[1], [0], [0], [1], [0, 0, 1, 1], [], []>} : vector<16x8xbf16>, vector<8x128xbf16>, vector<16x128xf32> -> vector<16x128xf32>
    %65 = arith.addf %41, %64 : vector<16x128xf32>
    %66 = vector.extract_strided_slice %9 {offsets = [0, 0, 16], sizes = [2, 8, 8], strides = [1, 1, 1]} : vector<2x8x96xbf16> to vector<2x8x8xbf16>
    %67 = vector.extract_strided_slice %9 {offsets = [0, 0, 48], sizes = [2, 8, 8], strides = [1, 1, 1]} : vector<2x8x96xbf16> to vector<2x8x8xbf16>
    %68 = vector.extract_strided_slice %9 {offsets = [0, 0, 80], sizes = [2, 8, 8], strides = [1, 1, 1]} : vector<2x8x96xbf16> to vector<2x8x8xbf16>
    "tpu.trace_start"() <{level = 10 : i32, message = "bqd,bkd->bqk"}> : () -> ()
    %cst_21 = arith.constant dense<0.000000e+00> : vector<2x8x8xf32>
    %69 = tpu.matmul %66, %67, %cst_21 {dimension_numbers = #tpu.dot_dimension_numbers<[2], [2], [1], [1], [0, 0, 0, 1, 1, 1], [0], [0]>} : vector<2x8x8xbf16>, vector<2x8x8xbf16>, vector<2x8x8xf32> -> vector<2x8x8xf32>
    "tpu.trace_stop"() : () -> ()
    %70 = vector.shape_cast %15 : vector<8x8xf32> to vector<1x8x8xf32>
    %71 = vector.broadcast %70 : vector<1x8x8xf32> to vector<2x8x8xf32>
    %72 = arith.addf %69, %71 : vector<2x8x8xf32>
    %cst_22 = arith.constant dense<0xFF800000> : vector<2x8xf32>
    %73 = vector.multi_reduction <maximumf>, %72, %cst_22 [2] : vector<2x8x8xf32> to vector<2x8xf32>
    %74 = vector.shape_cast %73 : vector<2x8xf32> to vector<2x8x1xf32>
    %75 = vector.broadcast %74 : vector<2x8x1xf32> to vector<2x8x8xf32>
    %76 = arith.subf %72, %75 : vector<2x8x8xf32>
    %77 = math.exp %76 : vector<2x8x8xf32>
    %cst_23 = arith.constant dense<0.000000e+00> : vector<2x8xf32>
    %78 = vector.multi_reduction <add>, %77, %cst_23 [2] : vector<2x8x8xf32> to vector<2x8xf32>
    %79 = vector.shape_cast %78 : vector<2x8xf32> to vector<2x8x1xf32>
    %80 = arith.truncf %77 : vector<2x8x8xf32> to vector<2x8x8xbf16>
    "tpu.trace_start"() <{level = 10 : i32, message = "bqk,bkd->bqd"}> : () -> ()
    %cst_24 = arith.constant dense<0.000000e+00> : vector<2x8x8xf32>
    %81 = tpu.matmul %80, %68, %cst_24 {dimension_numbers = #tpu.dot_dimension_numbers<[2], [1], [1], [2], [0, 0, 0, 1, 1, 2], [0], [0]>} : vector<2x8x8xbf16>, vector<2x8x8xbf16>, vector<2x8x8xf32> -> vector<2x8x8xf32>
    "tpu.trace_stop"() : () -> ()
    %82 = tpu.reciprocal %79 {approx = true} : vector<2x8x1xf32> -> vector<2x8x1xf32>
    %83 = vector.broadcast %82 : vector<2x8x1xf32> to vector<2x8x8xf32>
    %84 = arith.mulf %81, %83 : vector<2x8x8xf32>
    %85 = vector.shape_cast %84 : vector<2x8x8xf32> to vector<16x8xf32>
    %86 = arith.truncf %85 : vector<16x8xf32> to vector<16x8xbf16>
    %87 = vector.extract_strided_slice %16 {offsets = [16, 0], sizes = [8, 128], strides = [1, 1]} : vector<32x128xbf16> to vector<8x128xbf16>
    %cst_25 = arith.constant dense<0.000000e+00> : vector<16x128xf32>
    %88 = tpu.matmul %86, %87, %cst_25 {dimension_numbers = #tpu.dot_dimension_numbers<[1], [0], [0], [1], [0, 0, 1, 1], [], []>} : vector<16x8xbf16>, vector<8x128xbf16>, vector<16x128xf32> -> vector<16x128xf32>
    %89 = arith.addf %65, %88 : vector<16x128xf32>
    %90 = vector.extract_strided_slice %9 {offsets = [0, 0, 24], sizes = [2, 8, 8], strides = [1, 1, 1]} : vector<2x8x96xbf16> to vector<2x8x8xbf16>
    %91 = vector.extract_strided_slice %9 {offsets = [0, 0, 56], sizes = [2, 8, 8], strides = [1, 1, 1]} : vector<2x8x96xbf16> to vector<2x8x8xbf16>
    %92 = vector.extract_strided_slice %9 {offsets = [0, 0, 88], sizes = [2, 8, 8], strides = [1, 1, 1]} : vector<2x8x96xbf16> to vector<2x8x8xbf16>
    "tpu.trace_start"() <{level = 10 : i32, message = "bqd,bkd->bqk"}> : () -> ()
    %cst_26 = arith.constant dense<0.000000e+00> : vector<2x8x8xf32>
    %93 = tpu.matmul %90, %91, %cst_26 {dimension_numbers = #tpu.dot_dimension_numbers<[2], [2], [1], [1], [0, 0, 0, 1, 1, 1], [0], [0]>} : vector<2x8x8xbf16>, vector<2x8x8xbf16>, vector<2x8x8xf32> -> vector<2x8x8xf32>
    "tpu.trace_stop"() : () -> ()
    %94 = vector.shape_cast %15 : vector<8x8xf32> to vector<1x8x8xf32>
    %95 = vector.broadcast %94 : vector<1x8x8xf32> to vector<2x8x8xf32>
    %96 = arith.addf %93, %95 : vector<2x8x8xf32>
    %cst_27 = arith.constant dense<0xFF800000> : vector<2x8xf32>
    %97 = vector.multi_reduction <maximumf>, %96, %cst_27 [2] : vector<2x8x8xf32> to vector<2x8xf32>
    %98 = vector.shape_cast %97 : vector<2x8xf32> to vector<2x8x1xf32>
    %99 = vector.broadcast %98 : vector<2x8x1xf32> to vector<2x8x8xf32>
    %100 = arith.subf %96, %99 : vector<2x8x8xf32>
    %101 = math.exp %100 : vector<2x8x8xf32>
    %cst_28 = arith.constant dense<0.000000e+00> : vector<2x8xf32>
    %102 = vector.multi_reduction <add>, %101, %cst_28 [2] : vector<2x8x8xf32> to vector<2x8xf32>
    %103 = vector.shape_cast %102 : vector<2x8xf32> to vector<2x8x1xf32>
    %104 = arith.truncf %101 : vector<2x8x8xf32> to vector<2x8x8xbf16>
    "tpu.trace_start"() <{level = 10 : i32, message = "bqk,bkd->bqd"}> : () -> ()
    %cst_29 = arith.constant dense<0.000000e+00> : vector<2x8x8xf32>
    %105 = tpu.matmul %104, %92, %cst_29 {dimension_numbers = #tpu.dot_dimension_numbers<[2], [1], [1], [2], [0, 0, 0, 1, 1, 2], [0], [0]>} : vector<2x8x8xbf16>, vector<2x8x8xbf16>, vector<2x8x8xf32> -> vector<2x8x8xf32>
    "tpu.trace_stop"() : () -> ()
    %106 = tpu.reciprocal %103 {approx = true} : vector<2x8x1xf32> -> vector<2x8x1xf32>
    %107 = vector.broadcast %106 : vector<2x8x1xf32> to vector<2x8x8xf32>
    %108 = arith.mulf %105, %107 : vector<2x8x8xf32>
    %109 = vector.shape_cast %108 : vector<2x8x8xf32> to vector<16x8xf32>
    %110 = arith.truncf %109 : vector<16x8xf32> to vector<16x8xbf16>
    %111 = vector.extract_strided_slice %16 {offsets = [24, 0], sizes = [8, 128], strides = [1, 1]} : vector<32x128xbf16> to vector<8x128xbf16>
    %cst_30 = arith.constant dense<0.000000e+00> : vector<16x128xf32>
    %112 = tpu.matmul %110, %111, %cst_30 {dimension_numbers = #tpu.dot_dimension_numbers<[1], [0], [0], [1], [0, 0, 1, 1], [], []>} : vector<16x8xbf16>, vector<8x128xbf16>, vector<16x128xf32> -> vector<16x128xf32>
    %113 = arith.addf %89, %112 : vector<16x128xf32>
    %c0_31 = arith.constant 0 : index
    %c0_32 = arith.constant 0 : index
    %114 = vector.load %arg5[%c0_31, %c0_32] : memref<1x128xf32, #tpu.memory_space<vmem>>, vector<1x128xf32>
    %115 = vector.broadcast %114 : vector<1x128xf32> to vector<16x128xf32>
    %116 = arith.addf %113, %115 : vector<16x128xf32>
    %117 = vector.shape_cast %116 : vector<16x128xf32> to vector<2x8x128xf32>
    %c0_33 = arith.constant 0 : index
    %c0_34 = arith.constant 0 : index
    %c0_35 = arith.constant 0 : index
    %118 = vector.load %arg6[%c0_33, %c0_34, %c0_35] : memref<2x8x128xf32, #tpu.memory_space<vmem>>, vector<2x8x128xf32>
    tpu.vector_store %arg6[%c0_33, %c0_34, %c0_35], %117 {strides = array<i32>} : memref<2x8x128xf32, #tpu.memory_space<vmem>>, vector<2x8x128xf32>,
    return
  }
  func.func @transform_0(%arg0: i32) -> (i32, i32, i32) {
    %c0_i32 = arith.constant 0 : i32
    %c0_i32_0 = arith.constant 0 : i32
    %c0_i32_1 = arith.constant 0 : i32
    return %arg0, %c0_i32, %c0_i32_0 : i32, i32, i32
  }
  func.func @transform_1(%arg0: i32) -> (i32, i32) {
    %c0_i32 = arith.constant 0 : i32
    %c0_i32_0 = arith.constant 0 : i32
    %c0_i32_1 = arith.constant 0 : i32
    return %c0_i32, %c0_i32_0 : i32, i32
  }
  func.func @transform_2(%arg0: i32) -> (i32, i32) {
    %c0_i32 = arith.constant 0 : i32
    %c0_i32_0 = arith.constant 0 : i32
    %c0_i32_1 = arith.constant 0 : i32
    return %c0_i32, %c0_i32_0 : i32, i32
  }
  func.func @transform_3(%arg0: i32) -> (i32, i32) {
    %c0_i32 = arith.constant 0 : i32
    %c0_i32_0 = arith.constant 0 : i32
    %c0_i32_1 = arith.constant 0 : i32
    return %c0_i32, %c0_i32_0 : i32, i32
  }
  func.func @transform_4(%arg0: i32) -> (i32, i32) {
    %c0_i32 = arith.constant 0 : i32
    %c0_i32_0 = arith.constant 0 : i32
    %c0_i32_1 = arith.constant 0 : i32
    return %c0_i32, %c0_i32_0 : i32, i32
  }
  func.func @transform_5(%arg0: i32) -> (i32, i32, i32) {
    %c0_i32 = arith.constant 0 : i32
    %c0_i32_0 = arith.constant 0 : i32
    %c0_i32_1 = arith.constant 0 : i32
    return %arg0, %c0_i32, %c0_i32_0 : i32, i32, i32
  }
}

</mosaic_0001>

<bundles_post_ra>
// kernel: tpu_custom_call.1
= control target key start
LH: loop header
LB: loop body
LE: loop exit
PB: predicated region body
PF: predicated region fallthrough
CT: control target
= control target key end

     0   :  { %10 = vsyncpa [#allocation3], 0  ;;  %s1857_s0 = inlined_call_operand.hbm [shape: f32[2,8,32], index: 0, kind: input, shape index: {}]   ;;  %s1858_s1 = inlined_call_operand.hbm [shape: bf16[32,96], index: 1, kind: input, shape index: {}]   ;;  %s1859_s2 = inlined_call_operand.vmem [shape: f32[1,96], index: 2, kind: input, shape index: {}]   ;;  %s1860_s3 = inlined_call_operand.hbm [shape: bf16[32,128], index: 3, kind: input, shape index: {}]   ;;  %s1861_s4 = inlined_call_operand.vmem [shape: f32[1,128], index: 4, kind: input, shape index: {}]   ;;  %s1862_s5 = inlined_call_operand.hbm [shape: f32[2,8,128], index: 5, kind: output, shape index: {}]  }
   0x1   :  { %11 = vsyncpa [#allocation6], 0 }
   0x2   :  { %12 = vsyncpa [#allocation4], 0  ;;  %s1594_s18 = smov [#allocation5]  }
   0x3   :  { %s30_s19 = sshll.u32 %s1594_s18, 4  ;;  %s31_s19 = int_to_ptr.vmem [resolvable:$true] %s30_s19 }
   0x4   :  { %s1516_s20 = scalar_lea.vmem %s31_s19, 256  ;;  %p1521_p1 = scmp.lt.s32.totalorder %s31_s19, %s31_s19 }
   0x5   :  { %p1517_p0 = scmp.ne.s32.totalorder %s31_s19, %s1516_s20  ;;  %p1522_p2 = scmp.lt.s32.totalorder %s1516_s20, %s1516_s20 }
   0x7   :  { %p1523_p3 = por %p1522_p2, %p1521_p1 }
   0x9   :  { %p1524_p4 = pnand %p1523_p3, %p1517_p0 }
   0xb   :  { %1527 = shalt.err (!%p1524_p4)
}
   0xc   :  { %s1595_s21 = smov 64   ;;  %s1596_s22 = smov 4  }
   0xd   :  { %36 = dma.hbm_to_vmem [thread:$0]  %s1858_s1, 256, %s31_s19, [#allocation6], %s1595_s21, %s1595_s21, %s1596_s22  }
   0xe   :  { %s1597_s25 = smov [#allocation2]  }
   0xf   :  { %s18_s26 = sshll.u32 %s1597_s25, 4  ;;  %s19_s26 = int_to_ptr.vmem [resolvable:$true] %s18_s26 }
  0x10   :  { %s1536_s27 = scalar_lea.vmem %s19_s26, 256  ;;  %p1541_p6 = scmp.lt.s32.totalorder %s19_s26, %s19_s26 }
  0x11   :  { %p1537_p5 = scmp.ne.s32.totalorder %s19_s26, %s1536_s27  ;;  %p1542_p7 = scmp.lt.s32.totalorder %s1536_s27, %s1536_s27 }
  0x13   :  { %p1543_p8 = por %p1542_p7, %p1541_p6 }
  0x15   :  { %p1544_p9 = pnand %p1543_p8, %p1537_p5 }
  0x17   :  { %1547 = shalt.err (!%p1544_p9)
}
  0x18   :  { %s1598_s28 = smov 128   ;;  %s1599_s29 = smov 8  }
  0x19   :  { %24 = dma.hbm_to_vmem [thread:$0]  %s1857_s0, 256, %s19_s26, [#allocation3], %s1598_s28, %s1598_s28, %s1599_s29  }
  0x1a   :  { %s1600_s1 = smov [#allocation7]  }
  0x1b   :  { %s44_s7 = sshll.u32 %s1600_s1, 4  ;;  %s45_s7 = int_to_ptr.vmem [resolvable:$true] %s44_s7 }
  0x1c   :  { %s1556_s8 = scalar_lea.vmem %s45_s7, 256  ;;  %p1561_p11 = scmp.lt.s32.totalorder %s45_s7, %s45_s7 }
  0x1d   :  { %p1557_p10 = scmp.ne.s32.totalorder %s45_s7, %s1556_s8  ;;  %p1562_p12 = scmp.lt.s32.totalorder %s1556_s8, %s1556_s8 }
  0x1f   :  { %p1563_p13 = por %p1562_p12, %p1561_p11 }
  0x21   :  { %p1564_p0 = pnand %p1563_p13, %p1557_p10 }
  0x23   :  { %1567 = shalt.err (!%p1564_p0)
}
  0x24   :  { %50 = dma.hbm_to_vmem [thread:$0]  %s1860_s3, 256, %s45_s7, [#allocation6], %s1595_s21, %s1595_s21, %s1596_s22  }
  0x25   :  { %1588 = dma.done.wait [#allocation3], 256  }
  0x26   :  { %1589 = vsyncadd [#allocation3], 4294967040 }
  0x27   :  { %1590 = dma.done.wait [#allocation6], 512  }
  0x28   :  { %1591 = vsyncadd [#allocation6], 4294966784  ;;  %v1601_v0 = vmov 0.0   ;;  %vm1602_vm0 = vmmov 0   ;;  %v1474_v1 = vld [vmem:[#allocation5 + $0x8] sm:$0xff]   ;;  %v1475_v2 = vld [vmem:[#allocation5] sm:$0xff]   ;;  %v140_v21 = vlaneseq }
  0x29   :  { %1325 = vmatprep.subr.bf16.mxu0 %v1601_v0  ;;  %1329 = vmatprep.mubr.msk.bf16.mxu0 %vm1602_vm0, %v1601_v0  ;;  %v63_v3 = vld [vmem:[#allocation2] sm:$0xff]  ;;  %v64_v4 = vld [vmem:[#allocation2 + $0x8] sm:$0xff]  ;;  %vm89_vm1 = vcmask 261120   ;;  %s1603_s11 = smov 96   ;;  %s1604_s12 = smov 88   ;;  %vm152_vm2 = vcmask 64512  }
  0x2a   :  { %1333 = vmatprep.subr.bf16.mxu1 %v1601_v0  ;;  %1335 = vmatprep.mubr.msk.bf16.mxu1 %vm1602_vm0, %v1601_v0  ;;  %v65_v5 = vpack.c.bf16 %v64_v4, %v63_v3  ;;  %v1253_v6 = vld [vmem:[%s1859_s2] ss:$0 sm:$0xff]  ;;  %s1605_s2 = smov 120   ;;  %vm272_vm3 = vcmask 1043456   ;;  %v141_v22 = vshrl.u32 %v140_v21, 7  ;;  %v143_v23 = vand.u32 127, %v140_v21 }
  0x2b   :  { %1326 = vmatpush3.bf16.msra.mxu0 %v1474_v1  ;;  %v1606_v24 = vmov -1e+30   ;;  %s1607_s13 = smov 56   ;;  %s1608_s14 = smov 80  }
  0x2c   :  { %1327 = vmatprep.subr.bf16.mxu0 %v1601_v0  ;;  %vm144_vm4 = vcmp.le.s32.totalorder %v143_v23, %v141_v22  ;;  %s1609_s15 = smov 112   ;;  %s1610_s16 = smov 48  }
  0x2d   :  { %v1700_v25 = vsel %vm144_vm4, 0.0, %v1606_v24  ;;  %s1611_s17 = smov 72   ;;  %s1612_s18 = smov 104  }
  0x2e   :  { %s1613_s19 = smov 40   ;;  %s1614_s22 = smov [#allocation8]  }
  0x2f   :  { %1328 = vmatpush3.bf16.msra.mxu0 %v1475_v2  ;;  %s1240_s23 = sshll.u32 %s1614_s22, 4  ;;  %s1241_s23 = int_to_ptr.vmem [resolvable:$true] %s1240_s23 }
  0x30   :  { %1339 = vmatprep.subr.bf16.mxu0 %v1601_v0  ;;  %s1568_s24 = scalar_lea.vmem %s1241_s23, 256  ;;  %p1573_p2 = scmp.lt.s32.totalorder %s1241_s23, %s1241_s23 }
  0x31   :  { %p1569_p1 = scmp.ne.s32.totalorder %s1241_s23, %s1568_s24  ;;  %p1574_p3 = scmp.lt.s32.totalorder %s1568_s24, %s1568_s24 }
  0x32   :  { %1330 = vmatmul.mubr.msk.bf16.vlgmr.msra.gmra.mxu0 %vm89_vm1, %v65_v5 }
  0x33   :  { %1341 = vmatprep.mubr.msk.bf16.mxu0 %vm1602_vm0, %v1601_v0  ;;  %p1575_p4 = por %p1574_p3, %p1573_p2 }
  0x35   :  { %p1576_p5 = pnand %p1575_p4, %p1569_p1 }
  0xf2   :  { %v127_v7 = vpop.f32.mrf.mxu0 }
  0xf3   :  { %v128_v8 = vadd.f32 %v1253_v6, %v127_v7 }
  0xf4   :  { %v1331_v9 = vpop.f32.mrf.mxu0 }
  0xf5   :  { %v1674_v10 = vpack.c.bf16 %v128_v8, %v128_v8 }
  0xf6   :  { %v130_v11 = vpop.f32.mrf.mxu0 }
  0xf7   :  { %v131_v12 = vadd.f32 %v1253_v6, %v130_v11  ;;  %150 = vrot.lane.b32.xlu0 %v1674_v10, %s1603_s11 }
  0xf8   :  { %v1332_v13 = vpop.f32.mrf.mxu0 }
  0xf9   :  { %v1677_v14 = vpack.c.bf16 %v131_v12, %v131_v12 }
  0xfb   :  { %199 = vrot.lane.b32.xlu0 %v1677_v14, %s1603_s11 }
  0xff   :  { %267 = vrot.lane.b32.xlu0 %v1674_v10, %s1595_s21 }
 0x103   :  { %371 = vrot.lane.b32.xlu0 %v1674_v10, %s1604_s12 }
 0x107   :  { %421 = vrot.lane.b32.xlu0 %v1677_v14, %s1604_s12 }
 0x10b   :  { %369 = vrot.lane.b32.xlu0 %v1674_v10, %s1605_s2 }
 0x10f   :  { %419 = vrot.lane.b32.xlu0 %v1677_v14, %s1605_s2 }
 0x169   :  { %v151_v15 = vpop.permute.xlu0 %150 }
 0x16a   :  { %v157_v16 = vsel %vm152_vm2, %v151_v15, 0 }
 0x16b   :  { %1334 = vmatpush3.bf16.xpose.msra.mxu1 %v157_v16 }
 0x16c   :  { %1345 = vmatprep.subr.bf16.mxu1 %v1601_v0 }
 0x16d   :  { %v200_v17 = vpop.permute.xlu0 %199 }
 0x16e   :  { %v205_v18 = vsel %vm152_vm2, %v200_v17, 0 }
 0x16f   :  { %1340 = vmatpush3.bf16.xpose.msra.mxu0 %v205_v18 }
 0x170   :  { %1351 = vmatprep.subr.bf16.mxu0 %v1601_v0 }
 0x171   :  { %v268_v19 = vpop.permute.xlu0 %267 }
 0x172   :  { %v274_v20 = vsel %vm272_vm3, %v268_v19, 0  ;;  %1336 = vmatmul.mubr.msk.bf16.vlgmr.msra.gmra.mxu1 %vm152_vm2, %v1674_v10 }
 0x173   :  { %1346 = vmatpush3.bf16.msra.mxu1 %v274_v20  ;;  %1347 = vmatprep.mubr.msk.bf16.mxu1 %vm1602_vm0, %v1601_v0 }
 0x174   :  { %1357 = vmatprep.subr.bf16.mxu1 %v1601_v0 }
 0x175   :  { %v372_v46 = vpop.permute.xlu0 %371 }
 0x176   :  { %1342 = vmatmul.mubr.msk.bf16.vlgmr.msra.gmra.mxu0 %vm152_vm2, %v1677_v14  ;;  %v377_v50 = vsel %vm152_vm2, %v372_v46, 0 }
 0x177   :  { %1353 = vmatprep.mubr.msk.bf16.mxu0 %vm1602_vm0, %v1601_v0 }
 0x179   :  { %v422_v49 = vpop.permute.xlu0 %421 }
 0x17a   :  { %v427_v53 = vsel %vm152_vm2, %v422_v49, 0 }
 0x17d   :  { %v370_v54 = vpop.permute.xlu0 %369 }
 0x181   :  { %v420_v55 = vpop.permute.xlu0 %419 }
 0x232   :  { %v193_v26 = vpop.f32.mrf.mxu1 }
 0x233   :  { %v194_v27 = vadd.f32 %v193_v26, %v1700_v25 }
 0x234   :  { %v1337_v28 = vpop.f32.mrf.mxu1 }
 0x235   :  { %v247_v29 = vsel %vm152_vm2, %v194_v27, -inf }
 0x236   :  { %248 = vmax.xlane.f32.xlu1 %v247_v29  ;;  %v196_v30 = vpop.f32.mrf.mxu1  ;;  %v241_v31 = vpop.f32.mrf.mxu0 }
 0x237   :  { %v242_v32 = vadd.f32 %v241_v31, %v1700_v25  ;;  %v146_v31 = vld [vmem:[#allocation7] sm:$0xf] }
 0x238   :  { %v1338_v33 = vpop.f32.mrf.mxu1  ;;  %v1343_v34 = vpop.f32.mrf.mxu0 }
 0x239   :  { %v250_v35 = vsel %vm152_vm2, %v242_v32, -inf }
 0x23a   :  { %251 = vmax.xlane.f32.xlu1 %v250_v35  ;;  %v244_v36 = vpop.f32.mrf.mxu0  ;;  %v641_v35 = vsel %vm272_vm3, %v146_v31, 0 }
 0x23c   :  { %v1344_v37 = vpop.f32.mrf.mxu0 }
 0x24b   :  { %316 = vrot.lane.b32.xlu1 %v1677_v14, %s1595_s21 }
 0x2bf   :  { %v249_v38 = vpop.xlane.xlu1 %248 }
 0x2c0   :  { %v253_v39 = vsub.f32 %v194_v27, %v249_v38 }
 0x2c2   :  { %v255_v40 = vmul.f32 1.442695, %v253_v39 }
 0x2c3   :  { %v252_v41 = vpop.xlane.xlu1 %251 }
 0x2c4   :  { %1476 = vpow2.f32 %v255_v40  ;;  %v254_v42 = vsub.f32 %v242_v32, %v252_v41 }
 0x2c6   :  { %v257_v43 = vmul.f32 1.442695, %v254_v42 }
 0x2c7   :  { %v317_v44 = vpop.permute.xlu1 %316 }
 0x2c8   :  { %1478 = vpow2.f32 %v257_v43  ;;  %v322_v45 = vsel %vm272_vm3, %v317_v44, 0  ;;  %v147_v43 = vld [vmem:[#allocation7 + $0x4] sm:$0xf] }
 0x2c9   :  { %1352 = vmatpush3.bf16.msra.mxu0 %v322_v45  ;;  %v594_v44 = vsel %vm272_vm3, %v147_v43, 0 }
 0x2ca   :  { %1363 = vmatprep.subr.bf16.mxu0 %v1601_v0 }
 0x2d1   :  { %v1477_v47 = vpop.eup %1476 }
 0x2d2   :  { %v265_v48 = vpack.c.bf16 %v1477_v47, %v1477_v47  ;;  %v259_v15 = vsel %vm152_vm2, %v1477_v47, 0.0 }
 0x2d4   :  { %1348 = vmatmul.mubr.msk.bf16.vlgmr.msra.gmra.mxu1 %vm152_vm2, %v265_v48 }
 0x2d5   :  { %v1479_v51 = vpop.eup %1478  ;;  %1358 = vmatpush3.bf16.xpose.msra.mxu1 %v377_v50  ;;  %1359 = vmatprep.mubr.msk.bf16.mxu1 %vm1602_vm0, %v1601_v0 }
 0x2d6   :  { %v266_v52 = vpack.c.bf16 %v1479_v51, %v1479_v51  ;;  %1369 = vmatprep.subr.bf16.mxu1 %v1601_v0  ;;  %v262_v16 = vsel %vm152_vm2, %v1479_v51, 0.0 }
 0x2d8   :  { %1354 = vmatmul.mubr.msk.bf16.vlgmr.msra.gmra.mxu0 %vm152_vm2, %v266_v52 }
 0x2d9   :  { %1364 = vmatpush3.bf16.xpose.msra.mxu0 %v427_v53  ;;  %1365 = vmatprep.mubr.msk.bf16.mxu0 %vm1602_vm0, %v1601_v0 }
 0x2da   :  { %1375 = vmatprep.subr.bf16.mxu0 %v1601_v0 }
 0x2dc   :  { %1360 = vmatmul.mubr.msk.bf16.vlgmr.msra.gmra.mxu1 %vm152_vm2, %v370_v54 }
 0x2dd   :  { %1371 = vmatprep.mubr.msk.bf16.mxu1 %vm1602_vm0, %v1601_v0 }
 0x2e0   :  { %1366 = vmatmul.mubr.msk.bf16.vlgmr.msra.gmra.mxu0 %vm152_vm2, %v420_v55 }
 0x2e1   :  { %1377 = vmatprep.mubr.msk.bf16.mxu0 %vm1602_vm0, %v1601_v0 }
 0x394   :  { %v1726_v56 = vpop.f32.mrf.mxu1 }
 0x396   :  { %v1349_v57 = vpop.f32.mrf.mxu1 }
 0x398   :  { %v313_v58 = vpop.f32.mrf.mxu1  ;;  %v1728_v59 = vpop.f32.mrf.mxu0 }
 0x39a   :  { %v1350_v60 = vpop.f32.mrf.mxu1  ;;  %v1355_v61 = vpop.f32.mrf.mxu0 }
 0x39c   :  { %v361_v62 = vpop.f32.mrf.mxu0  ;;  %v413_v63 = vpop.f32.mrf.mxu1 }
 0x39d   :  { %v414_v1 = vadd.f32 %v413_v63, %v1700_v25 }
 0x39e   :  { %v1356_v2 = vpop.f32.mrf.mxu0  ;;  %v1361_v3 = vpop.f32.mrf.mxu1 }
 0x39f   :  { %v469_v4 = vsel %vm152_vm2, %v414_v1, -inf }
 0x3a0   :  { %v416_v5 = vpop.f32.mrf.mxu1  ;;  %470 = vmax.xlane.f32.xlu1 %v469_v4  ;;  %v463_v6 = vpop.f32.mrf.mxu0 }
 0x3a1   :  { %v464_v7 = vadd.f32 %v463_v6, %v1700_v25 }
 0x3a2   :  { %v1362_v8 = vpop.f32.mrf.mxu1  ;;  %v1367_v9 = vpop.f32.mrf.mxu0 }
 0x3a3   :  { %v472_v11 = vsel %vm152_vm2, %v464_v7, -inf }
 0x3a4   :  { %473 = vmax.xlane.f32.xlu0 %v472_v11  ;;  %v466_v12 = vpop.f32.mrf.mxu0 }
 0x3a6   :  { %v1368_v13 = vpop.f32.mrf.mxu0 }
 0x3b1   :  { %537 = vrot.lane.b32.xlu1 %v1677_v14, %s1607_s13 }
 0x3ba   :  { %489 = vrot.lane.b32.xlu0 %v1674_v10, %s1607_s13 }
 0x3d5   :  { %260 = vadd.xlane.f32.xlu1 %v259_v15 }
 0x3d9   :  { %263 = vadd.xlane.f32.xlu0 %v262_v16 }
 0x429   :  { %v471_v17 = vpop.xlane.xlu1 %470 }
 0x42a   :  { %v475_v18 = vsub.f32 %v414_v1, %v471_v17 }
 0x42c   :  { %v477_v19 = vmul.f32 1.442695, %v475_v18 }
 0x42d   :  { %v538_v20 = vpop.permute.xlu1 %537  ;;  %v474_v21 = vpop.xlane.xlu0 %473 }
 0x42e   :  { %1480 = vpow2.f32 %v477_v19  ;;  %v543_v22 = vsel %vm272_vm3, %v538_v20, 0  ;;  %v476_v23 = vsub.f32 %v464_v7, %v474_v21 }
 0x42f   :  { %1376 = vmatpush3.bf16.msra.mxu0 %v543_v22 }
 0x430   :  { %v479_v24 = vmul.f32 1.442695, %v476_v23  ;;  %1387 = vmatprep.subr.bf16.mxu0 %v1601_v0 }
 0x431   :  { %v490_v26 = vpop.permute.xlu0 %489 }
 0x432   :  { %1482 = vpow2.f32 %v479_v24  ;;  %v495_v27 = vsel %vm272_vm3, %v490_v26, 0 }
 0x433   :  { %1370 = vmatpush3.bf16.msra.mxu1 %v495_v27 }
 0x434   :  { %1381 = vmatprep.subr.bf16.mxu1 %v1601_v0 }
 0x43b   :  { %v1481_v28 = vpop.eup %1480 }
 0x43c   :  { %v481_v29 = vsel %vm152_vm2, %v1481_v28, 0.0  ;;  %v487_v30 = vpack.c.bf16 %v1481_v28, %v1481_v28 }
 0x43d   :  { %482 = vadd.xlane.f32.xlu0 %v481_v29 }
 0x43e   :  { %1372 = vmatmul.mubr.msk.bf16.vlgmr.msra.gmra.mxu1 %vm152_vm2, %v487_v30 }
 0x43f   :  { %v1483_v32 = vpop.eup %1482  ;;  %1383 = vmatprep.mubr.msk.bf16.mxu1 %vm1602_vm0, %v1601_v0  ;;  %1382 = vmatpush3.bf16.msra.mxu1 %v594_v44 }
 0x440   :  { %v484_v33 = vsel %vm152_vm2, %v1483_v32, 0.0  ;;  %v488_v34 = vpack.c.bf16 %v1483_v32, %v1483_v32  ;;  %1393 = vmatprep.subr.bf16.mxu1 %v1601_v0 }
 0x441   :  { %485 = vadd.xlane.f32.xlu1 %v484_v33 }
 0x442   :  { %1378 = vmatmul.mubr.msk.bf16.vlgmr.msra.gmra.mxu0 %vm152_vm2, %v488_v34 }
 0x443   :  { %1388 = vmatpush3.bf16.msra.mxu0 %v641_v35  ;;  %1389 = vmatprep.mubr.msk.bf16.mxu0 %vm1602_vm0, %v1601_v0 }
 0x444   :  { %1399 = vmatprep.subr.bf16.mxu0 %v1601_v0 }
 0x452   :  { %736 = vrot.lane.b32.xlu1 %v1677_v14, %s1608_s14 }
 0x453   :  { %686 = vrot.lane.b32.xlu0 %v1674_v10, %s1608_s14 }
 0x456   :  { %684 = vrot.lane.b32.xlu1 %v1674_v10, %s1609_s15 }
 0x457   :  { %734 = vrot.lane.b32.xlu0 %v1677_v14, %s1609_s15 }
 0x45e   :  { %v261_v36 = vpop.xlane.xlu1 %260 }
 0x45f   :  { %1484 = vrcp.f32 %v261_v36 }
 0x462   :  { %v264_v37 = vpop.xlane.xlu0 %263 }
 0x463   :  { %1486 = vrcp.f32 %v264_v37 }
 0x46c   :  { %v1485_v38 = vpop.eup %1484 }
 0x46d   :  { %v366_v40 = vmul.f32 %v1485_v38, %v1726_v56 }
 0x470   :  { %v1487_v39 = vpop.eup %1486 }
 0x471   :  { %v367_v41 = vmul.f32 %v1487_v39, %v1728_v59 }
 0x473   :  { %v368_v42 = vpack.c.bf16 %v367_v41, %v366_v40 }
 0x475   :  { %1390 = vmatmul.mubr.msk.bf16.vlgmr.msra.gmra.mxu0 %vm152_vm2, %v368_v42  ;;  %v148_v42 = vld [vmem:[#allocation7 + $0x8] sm:$0xf] }
 0x476   :  { %1401 = vmatprep.mubr.msk.bf16.mxu0 %vm1602_vm0, %v1601_v0  ;;  %v909_v43 = vsel %vm272_vm3, %v148_v42, 0 }
 0x4c6   :  { %v483_v45 = vpop.xlane.xlu0 %482 }
 0x4c7   :  { %1488 = vrcp.f32 %v483_v45 }
 0x4ca   :  { %v486_v46 = vpop.xlane.xlu1 %485  ;;  %v687_v49 = vpop.permute.xlu0 %686 }
 0x4cb   :  { %1490 = vrcp.f32 %v486_v46  ;;  %v692_v63 = vsel %vm152_vm2, %v687_v49, 0 }
 0x4ce   :  { %v737_v47 = vpop.permute.xlu1 %736  ;;  %v735_v50 = vpop.permute.xlu0 %734 }
 0x4cf   :  { %v742_v48 = vsel %vm152_vm2, %v737_v47, 0 }
 0x4d0   :  { %1400 = vmatpush3.bf16.xpose.msra.mxu0 %v742_v48 }
 0x4d1   :  { %1411 = vmatprep.subr.bf16.mxu0 %v1601_v0 }
 0x4d2   :  { %v685_v2 = vpop.permute.xlu1 %684 }
 0x4d4   :  { %v1489_v53 = vpop.eup %1488 }
 0x4d7   :  { %1402 = vmatmul.mubr.msk.bf16.vlgmr.msra.gmra.mxu0 %vm152_vm2, %v735_v50 }
 0x4d8   :  { %1413 = vmatprep.mubr.msk.bf16.mxu0 %vm1602_vm0, %v1601_v0  ;;  %v1491_v54 = vpop.eup %1490 }
 0x4fe   :  { %v531_v51 = vpop.f32.mrf.mxu1 }
 0x4ff   :  { %v587_v57 = vmul.f32 %v1489_v53, %v531_v51 }
 0x500   :  { %v1373_v52 = vpop.f32.mrf.mxu1 }
 0x502   :  { %v534_v55 = vpop.f32.mrf.mxu1  ;;  %v579_v56 = vpop.f32.mrf.mxu0 }
 0x503   :  { %v588_v58 = vmul.f32 %v1491_v54, %v579_v56 }
 0x504   :  { %v1374_v59 = vpop.f32.mrf.mxu1  ;;  %v1379_v60 = vpop.f32.mrf.mxu0 }
 0x505   :  { %v589_v61 = vpack.c.bf16 %v588_v58, %v587_v57 }
 0x506   :  { %v582_v62 = vpop.f32.mrf.mxu0 }
 0x507   :  { %1384 = vmatmul.mubr.msk.bf16.vlgmr.msra.gmra.mxu1 %vm152_vm2, %v589_v61 }
 0x508   :  { %1394 = vmatpush3.bf16.xpose.msra.mxu1 %v692_v63  ;;  %v1380_v1 = vpop.f32.mrf.mxu0  ;;  %1395 = vmatprep.mubr.msk.bf16.mxu1 %vm1602_vm0, %v1601_v0 }
 0x509   :  { %1405 = vmatprep.subr.bf16.mxu1 %v1601_v0 }
 0x50f   :  { %1396 = vmatmul.mubr.msk.bf16.vlgmr.msra.gmra.mxu1 %vm152_vm2, %v685_v2 }
 0x510   :  { %1407 = vmatprep.mubr.msk.bf16.mxu1 %vm1602_vm0, %v1601_v0 }
 0x535   :  { %v1776_v3 = vpop.f32.mrf.mxu0 }
 0x537   :  { %v1391_v4 = vpop.f32.mrf.mxu0 }
 0x539   :  { %v1778_v5 = vpop.f32.mrf.mxu0 }
 0x53b   :  { %v1392_v6 = vpop.f32.mrf.mxu0 }
 0x597   :  { %v778_v7 = vpop.f32.mrf.mxu0 }
 0x598   :  { %v779_v8 = vadd.f32 %v778_v7, %v1700_v25 }
 0x599   :  { %v1403_v9 = vpop.f32.mrf.mxu0 }
 0x59a   :  { %v787_v11 = vsel %vm152_vm2, %v779_v8, -inf }
 0x59b   :  { %788 = vmax.xlane.f32.xlu0 %v787_v11  ;;  %v781_v12 = vpop.f32.mrf.mxu0 }
 0x59d   :  { %v1404_v13 = vpop.f32.mrf.mxu0 }
 0x5b1   :  { %804 = vrot.lane.b32.xlu0 %v1674_v10, %s1610_s16 }
 0x5c7   :  { %v1783_v15 = vpop.f32.mrf.mxu1 }
 0x5c8   :  { %v678_v11 = vadd.f32 %v1776_v3, %v1783_v15 }
 0x5c9   :  { %v1385_v16 = vpop.f32.mrf.mxu1 }
 0x5cb   :  { %v1785_v17 = vpop.f32.mrf.mxu1 }
 0x5cd   :  { %v1386_v18 = vpop.f32.mrf.mxu1 }
 0x5ce   :  { %v681_v18 = vadd.f32 %v1778_v5, %v1785_v17 }
 0x5cf   :  { %v728_v19 = vpop.f32.mrf.mxu1 }
 0x5d0   :  { %v729_v20 = vadd.f32 %v728_v19, %v1700_v25 }
 0x5d1   :  { %v1397_v21 = vpop.f32.mrf.mxu1 }
 0x5d2   :  { %v784_v22 = vsel %vm152_vm2, %v729_v20, -inf }
 0x5d3   :  { %785 = vmax.xlane.f32.xlu1 %v784_v22  ;;  %v731_v23 = vpop.f32.mrf.mxu1 }
 0x5d5   :  { %v1398_v24 = vpop.f32.mrf.mxu1 }
 0x5e4   :  { %852 = vrot.lane.b32.xlu1 %v1677_v14, %s1610_s16 }
 0x624   :  { %v789_v26 = vpop.xlane.xlu0 %788 }
 0x625   :  { %v791_v27 = vsub.f32 %v779_v8, %v789_v26 }
 0x627   :  { %v794_v28 = vmul.f32 1.442695, %v791_v27 }
 0x628   :  { %v805_v29 = vpop.permute.xlu0 %804 }
 0x629   :  { %1492 = vpow2.f32 %v794_v28  ;;  %v810_v30 = vsel %vm272_vm3, %v805_v29, 0 }
 0x62a   :  { %1406 = vmatpush3.bf16.msra.mxu1 %v810_v30 }
 0x62b   :  { %1417 = vmatprep.subr.bf16.mxu1 %v1601_v0 }
 0x636   :  { %v1493_v31 = vpop.eup %1492 }
 0x637   :  { %v799_v32 = vsel %vm152_vm2, %v1493_v31, 0.0  ;;  %v803_v38 = vpack.c.bf16 %v1493_v31, %v1493_v31 }
 0x638   :  { %800 = vadd.xlane.f32.xlu0 %v799_v32 }
 0x64e   :  { %956 = vrot.lane.b32.xlu0 %v1674_v10, %s1611_s17 }
 0x652   :  { %1004 = vrot.lane.b32.xlu0 %v1677_v14, %s1612_s18 }
 0x65c   :  { %v786_v33 = vpop.xlane.xlu1 %785 }
 0x65d   :  { %v790_v34 = vsub.f32 %v729_v20, %v786_v33 }
 0x65f   :  { %v792_v35 = vmul.f32 1.442695, %v790_v34 }
 0x660   :  { %v853_v36 = vpop.permute.xlu1 %852 }
 0x661   :  { %1494 = vpow2.f32 %v792_v35  ;;  %v858_v37 = vsel %vm272_vm3, %v853_v36, 0 }
 0x662   :  { %1412 = vmatpush3.bf16.msra.mxu0 %v858_v37 }
 0x663   :  { %1423 = vmatprep.subr.bf16.mxu0 %v1601_v0 }
 0x665   :  { %1414 = vmatmul.mubr.msk.bf16.vlgmr.msra.gmra.mxu0 %vm152_vm2, %v803_v38  ;;  %v149_v38 = vld [vmem:[#allocation7 + $0xc] sm:$0xf] }
 0x666   :  { %1425 = vmatprep.mubr.msk.bf16.mxu0 %vm1602_vm0, %v1601_v0 }
 0x66e   :  { %v1495_v39 = vpop.eup %1494 }
 0x66f   :  { %v796_v40 = vsel %vm152_vm2, %v1495_v39, 0.0  ;;  %v802_v41 = vpack.c.bf16 %v1495_v39, %v1495_v39  ;;  %v1179_v39 = vsel %vm272_vm3, %v149_v38, 0 }
 0x670   :  { %797 = vadd.xlane.f32.xlu1 %v796_v40 }
 0x671   :  { %1408 = vmatmul.mubr.msk.bf16.vlgmr.msra.gmra.mxu1 %vm152_vm2, %v802_v41 }
 0x672   :  { %1419 = vmatprep.mubr.msk.bf16.mxu1 %vm1602_vm0, %v1601_v0  ;;  %1418 = vmatpush3.bf16.msra.mxu1 %v909_v43 }
 0x673   :  { %1429 = vmatprep.subr.bf16.mxu1 %v1601_v0 }
 0x681   :  { %1006 = vrot.lane.b32.xlu1 %v1677_v14, %s1611_s17 }
 0x685   :  { %954 = vrot.lane.b32.xlu1 %v1674_v10, %s1612_s18 }
 0x6c1   :  { %v801_v44 = vpop.xlane.xlu0 %800 }
 0x6c2   :  { %1496 = vrcp.f32 %v801_v44 }
 0x6c5   :  { %v957_v45 = vpop.permute.xlu0 %956 }
 0x6c6   :  { %v962_v46 = vsel %vm152_vm2, %v957_v45, 0 }
 0x6c7   :  { %1424 = vmatpush3.bf16.xpose.msra.mxu0 %v962_v46 }
 0x6c8   :  { %1435 = vmatprep.subr.bf16.mxu0 %v1601_v0 }
 0x6c9   :  { %v1005_v1 = vpop.permute.xlu0 %1004 }
 0x6cf   :  { %v1497_v54 = vpop.eup %1496 }
 0x6f9   :  { %v798_v47 = vpop.xlane.xlu1 %797 }
 0x6fa   :  { %1498 = vrcp.f32 %v798_v47 }
 0x6fd   :  { %v1007_v48 = vpop.permute.xlu1 %1006 }
 0x6fe   :  { %v1012_v62 = vsel %vm152_vm2, %v1007_v48, 0 }
 0x701   :  { %v955_v49 = vpop.permute.xlu1 %954 }
 0x702   :  { %1426 = vmatmul.mubr.msk.bf16.vlgmr.msra.gmra.mxu0 %vm152_vm2, %v955_v49 }
 0x703   :  { %1437 = vmatprep.mubr.msk.bf16.mxu0 %vm1602_vm0, %v1601_v0 }
 0x707   :  { %v1499_v55 = vpop.eup %1498 }
 0x725   :  { %v894_v50 = vpop.f32.mrf.mxu0 }
 0x726   :  { %v903_v57 = vmul.f32 %v1497_v54, %v894_v50 }
 0x727   :  { %v1415_v51 = vpop.f32.mrf.mxu0 }
 0x729   :  { %v897_v52 = vpop.f32.mrf.mxu0 }
 0x72b   :  { %v1416_v53 = vpop.f32.mrf.mxu0 }
 0x731   :  { %v846_v56 = vpop.f32.mrf.mxu1 }
 0x732   :  { %v902_v58 = vmul.f32 %v1499_v55, %v846_v56  ;;  %v1279_v55 = vld [vmem:[%s1861_s4] ss:$0 sm:$0xff] }
 0x733   :  { %v1409_v59 = vpop.f32.mrf.mxu1 }
 0x734   :  { %v904_v60 = vpack.c.bf16 %v903_v57, %v902_v58 }
 0x735   :  { %v849_v61 = vpop.f32.mrf.mxu1 }
 0x736   :  { %1420 = vmatmul.mubr.msk.bf16.vlgmr.msra.gmra.mxu1 %vm152_vm2, %v904_v60 }
 0x737   :  { %1430 = vmatpush3.bf16.xpose.msra.mxu1 %v1012_v62  ;;  %v1410_v63 = vpop.f32.mrf.mxu1  ;;  %1431 = vmatprep.mubr.msk.bf16.mxu1 %vm1602_vm0, %v1601_v0 }
 0x738   :  { %1441 = vmatprep.subr.bf16.mxu1 %v1601_v0 }
 0x73e   :  { %1432 = vmatmul.mubr.msk.bf16.vlgmr.msra.gmra.mxu1 %vm152_vm2, %v1005_v1 }
 0x73f   :  { %1443 = vmatprep.mubr.msk.bf16.mxu1 %vm1602_vm0, %v1601_v0 }
 0x7c2   :  { %v998_v2 = vpop.f32.mrf.mxu0 }
 0x7c3   :  { %v999_v4 = vadd.f32 %v998_v2, %v1700_v25 }
 0x7c4   :  { %v1427_v6 = vpop.f32.mrf.mxu0 }
 0x7c5   :  { %v1054_v7 = vsel %vm152_vm2, %v999_v4, -inf }
 0x7c6   :  { %1055 = vmax.xlane.f32.xlu1 %v1054_v7  ;;  %v1001_v8 = vpop.f32.mrf.mxu0 }
 0x7c8   :  { %v1428_v9 = vpop.f32.mrf.mxu0 }
 0x7d7   :  { %1122 = vrot.lane.b32.xlu1 %v1677_v14, %s1613_s19 }
 0x7f6   :  { %v945_v12 = vpop.f32.mrf.mxu1 }
 0x7f7   :  { %v1826_v13 = vadd.f32 %v945_v12, %v678_v11 }
 0x7f8   :  { %v1421_v16 = vpop.f32.mrf.mxu1 }
 0x7fa   :  { %v948_v19 = vpop.f32.mrf.mxu1 }
 0x7fb   :  { %v1830_v20 = vadd.f32 %v948_v19, %v681_v18 }
 0x7fc   :  { %v1422_v21 = vpop.f32.mrf.mxu1 }
 0x7fe   :  { %v1048_v22 = vpop.f32.mrf.mxu1 }
 0x7ff   :  { %v1049_v23 = vadd.f32 %v1048_v22, %v1700_v25 }
 0x800   :  { %v1433_v24 = vpop.f32.mrf.mxu1 }
 0x801   :  { %v1057_v14 = vsel %vm152_vm2, %v1049_v23, -inf }
 0x802   :  { %1058 = vmax.xlane.f32.xlu0 %v1057_v14  ;;  %v1051_v26 = vpop.f32.mrf.mxu1 }
 0x804   :  { %v1434_v3 = vpop.f32.mrf.mxu1 }
 0x818   :  { %1074 = vrot.lane.b32.xlu0 %v1674_v10, %s1613_s19 }
 0x84f   :  { %v1056_v15 = vpop.xlane.xlu1 %1055 }
 0x850   :  { %v1060_v27 = vsub.f32 %v999_v4, %v1056_v15 }
 0x852   :  { %v1062_v28 = vmul.f32 1.442695, %v1060_v27 }
 0x853   :  { %v1123_v29 = vpop.permute.xlu1 %1122 }
 0x854   :  { %1500 = vpow2.f32 %v1062_v28  ;;  %v1128_v5 = vsel %vm272_vm3, %v1123_v29, 0 }
 0x855   :  { %1442 = vmatpush3.bf16.msra.mxu1 %v1128_v5 }
 0x861   :  { %v1501_v17 = vpop.eup %1500 }
 0x862   :  { %v1066_v30 = vsel %vm152_vm2, %v1501_v17, 0.0  ;;  %v1072_v10 = vpack.c.bf16 %v1501_v17, %v1501_v17 }
 0x863   :  { %1067 = vadd.xlane.f32.xlu1 %v1066_v30 }
 0x88b   :  { %v1059_v25 = vpop.xlane.xlu0 %1058 }
 0x88c   :  { %v1061_v31 = vsub.f32 %v1049_v23, %v1059_v25 }
 0x88e   :  { %v1064_v32 = vmul.f32 1.442695, %v1061_v31 }
 0x88f   :  { %v1075_v33 = vpop.permute.xlu0 %1074 }
 0x890   :  { %1502 = vpow2.f32 %v1064_v32  ;;  %v1080_v34 = vsel %vm272_vm3, %v1075_v33, 0 }
 0x891   :  { %1436 = vmatpush3.bf16.msra.mxu0 %v1080_v34 }
 0x892   :  { %1447 = vmatprep.subr.bf16.mxu0 %v1601_v0 }
 0x894   :  { %1438 = vmatmul.mubr.msk.bf16.vlgmr.msra.gmra.mxu0 %vm152_vm2, %v1072_v10 }
 0x895   :  { %1449 = vmatprep.mubr.msk.bf16.mxu0 %vm1602_vm0, %v1601_v0  ;;  %1448 = vmatpush3.bf16.msra.mxu0 %v1179_v39 }
 0x89d   :  { %v1503_v35 = vpop.eup %1502 }
 0x89e   :  { %v1069_v36 = vsel %vm152_vm2, %v1503_v35, 0.0  ;;  %v1073_v37 = vpack.c.bf16 %v1503_v35, %v1503_v35 }
 0x89f   :  { %1070 = vadd.xlane.f32.xlu0 %v1069_v36 }
 0x8a0   :  { %1444 = vmatmul.mubr.msk.bf16.vlgmr.msra.gmra.mxu1 %vm152_vm2, %v1073_v37 }
 0x8ec   :  { %v1068_v40 = vpop.xlane.xlu1 %1067 }
 0x8ed   :  { %1504 = vrcp.f32 %v1068_v40 }
 0x8fa   :  { %v1505_v0 = vpop.eup %1504 }
 0x928   :  { %v1071_v41 = vpop.xlane.xlu0 %1070 }
 0x929   :  { %1506 = vrcp.f32 %v1071_v41 }
 0x936   :  { %v1507_v46 = vpop.eup %1506 }
 0x954   :  { %v1116_v42 = vpop.f32.mrf.mxu0 }
 0x955   :  { %v1172_v48 = vmul.f32 %v1505_v0, %v1116_v42 }
 0x956   :  { %v1439_v43 = vpop.f32.mrf.mxu0 }
 0x958   :  { %v1119_v44 = vpop.f32.mrf.mxu0 }
 0x95a   :  { %v1440_v45 = vpop.f32.mrf.mxu0 }
 0x960   :  { %v1164_v47 = vpop.f32.mrf.mxu1 }
 0x961   :  { %v1173_v49 = vmul.f32 %v1507_v46, %v1164_v47 }
 0x962   :  { %v1445_v50 = vpop.f32.mrf.mxu1 }
 0x963   :  { %v1174_v51 = vpack.c.bf16 %v1173_v49, %v1172_v48 }
 0x964   :  { %v1167_v52 = vpop.f32.mrf.mxu1 }
 0x965   :  { %1450 = vmatmul.mubr.msk.bf16.vlgmr.msra.gmra.mxu0 %vm152_vm2, %v1174_v51 }
 0x966   :  { %v1446_v53 = vpop.f32.mrf.mxu1 }
 0xa25   :  { %v1215_v54 = vpop.f32.mrf.mxu0 }
 0xa26   :  { %v1222_v56 = vadd.f32 %v1215_v54, %v1826_v13 }
 0xa27   :  { %v1451_v57 = vpop.f32.mrf.mxu0 }
 0xa28   :  { %v1231_v58 = vadd.f32 %v1279_v55, %v1222_v56 }
 0xa29   :  { %v1218_v59 = vpop.f32.mrf.mxu0 }
 0xa2a   :  { %1233 = vst [vmem:[#allocation8] sm:$0xff] %v1231_v58  ;;  %v1223_v60 = vadd.f32 %v1218_v59, %v1830_v20 }
 0xa2b   :  { %v1452_v61 = vpop.f32.mrf.mxu0 }
 0xa2c   :  { %v1232_v62 = vadd.f32 %v1279_v55, %v1223_v60 }
 0xa2e   :  { %1234 = vst [vmem:[#allocation8 + $0x8] sm:$0xff] %v1232_v62 }
 0xa2f   :  { %1579 = shalt.err (!%p1576_p5)
}
 0xa30   :  { %1246 = dma.vmem_to_hbm [thread:$0]  %s1241_s23, 256, %s1862_s5, [#allocation4], %s1598_s28, %s1598_s28, %s1599_s29  }
 0xa31   :  { %1592 = dma.done.wait [#allocation4], 256  }
 0xa32   :  { %1593 = vsyncadd [#allocation4], 4294967040 }
 0xa33   :  { %1250 = vsyncpa [#allocation3], 1 }
 0xa34   :  { %1251 = vsyncpa [#allocation6], 1 }
 0xa35   :  { %1252 = vsyncpa [#allocation4], 1 }

</bundles_post_ra>
